<compile_context>
chip_gen: v7x
topology: tpu7x:2x2x1
jax: 0.10.0
libtpu: 0.0.40
codegen_flags: <defaults>
</compile_context>

<pallas_src>
import functools

import jax
import jax.numpy as jnp
from jax.experimental import pallas as pl
from jax.experimental.pallas import tpu as pltpu


def _dice_sums_kernel(score_ref, label_ref, out_ref,
                      inter_acc, y_acc, z_acc, *,
                      hw, tile_n, apply_softmax, need_mask):
    k = pl.program_id(1)

    @pl.when(k == 0)
    def _():
        inter_acc[...] = jnp.zeros_like(inter_acc)
        y_acc[...] = jnp.zeros_like(y_acc)
        z_acc[...] = jnp.zeros_like(z_acc)

    score = score_ref[...].astype(jnp.float32)   # (C, tile_n)
    labels = label_ref[...]                      # (1, tile_n) int32
    C = score.shape[0]

    if apply_softmax:
        # Softmax over the class (sublane) axis; per-column, so any garbage
        # in a ragged tail column stays confined to that column.
        m = jnp.max(score, axis=0, keepdims=True)
        e = jnp.exp(score - m)
        score = e * pl.reciprocal(jnp.sum(e, axis=0, keepdims=True), approx=True)

    # One-hot via int32 compare against a class iota (broadcast over lanes).
    onehot_b = jax.lax.broadcasted_iota(jnp.int32, (C, tile_n), 0) == labels

    if need_mask:
        # Ragged last tile: columns >= hw hold undefined data; zero them out.
        col = jax.lax.broadcasted_iota(jnp.int32, (1, tile_n), 1) + k * tile_n
        valid = col < hw
        score = jnp.where(valid, score, 0.0)
        onehot_b = onehot_b & valid

    onehot = onehot_b.astype(jnp.float32)

    inter_acc[...] += jnp.sum(score * onehot, axis=1, keepdims=True)   # (C, 1)
    y_acc[...] += jnp.sum(onehot, axis=1, keepdims=True)               # (C, 1)
    z_acc[...] += jnp.sum(score * score, axis=1, keepdims=True)        # (C, 1)

    @pl.when(k == pl.num_programs(1) - 1)
    def _():
        out_ref[...] = jnp.concatenate(
            [inter_acc[...], y_acc[...], z_acc[...]], axis=1)          # (C, 3)


def dice_loss(inputs, target, n_classes, weight=None, softmax=False,
              tile_n=8192):
    """Pallas implementation of DiceLoss.forward.

    inputs: (B, C, H, W) float  (NCHW, like PyTorch)
    target: (B, H, W) integer class labels
    """
    B, C, H, W = inputs.shape
    assert C == n_classes, f"predict channels {C} & n_classes {n_classes} mismatch"
    if weight is None:
        weight = [1.0] * n_classes
    w = jnp.asarray(weight, dtype=jnp.float32)

    HW = H * W
    # Free reshapes only -- no transpose, no pad, no extra HBM traffic.
    score = inputs.reshape(B, C, HW)
    labels = target.reshape(B, 1, HW).astype(jnp.int32)

    # Clamp the lane tile to at most one 128-aligned block covering HW.
    hw_pad = ((HW + 127) // 128) * 128
    tile_n = max(128, min(int(tile_n), hw_pad))
    tile_n = ((tile_n + 127) // 128) * 128
    num_tiles = pl.cdiv(HW, tile_n)
    need_mask = (HW % tile_n) != 0

    # Only raise the scoped-VMEM limit if the double-buffered blocks need it
    # (relevant on v5e with its 16 MiB default scoped limit).
    block_bytes = (C + 1) * tile_n * 4
    cp_kwargs = dict(dimension_semantics=("parallel", "arbitrary"))
    vmem_est = 4 * block_bytes + (1 << 20)
    if vmem_est > 12 * 1024 * 1024:
        cp_kwargs["vmem_limit_bytes"] = min(vmem_est, 60 * 1024 * 1024)

    sums = pl.pallas_call(
        functools.partial(_dice_sums_kernel, hw=HW, tile_n=tile_n,
                          apply_softmax=softmax, need_mask=need_mask),
        out_shape=jax.ShapeDtypeStruct((B, C, 3), jnp.float32),
        grid_spec=pltpu.PrefetchScalarGridSpec(
            num_scalar_prefetch=0,
            grid=(B, num_tiles),
            in_specs=[
                pl.BlockSpec((None, C, tile_n), lambda b, k: (b, 0, k)),
                pl.BlockSpec((None, 1, tile_n), lambda b, k: (b, 0, k)),
            ],
            out_specs=pl.BlockSpec((None, C, 3), lambda b, k: (b, 0, 0)),
            scratch_shapes=[pltpu.VMEM((C, 1), jnp.float32)] * 3,
        ),
        compiler_params=pltpu.CompilerParams(**cp_kwargs),
    )(score, labels)

    totals = jnp.sum(sums, axis=0)          # (C, 3): reduce per-batch partials
    intersect = totals[:, 0]
    y_sum = totals[:, 1]
    z_sum = totals[:, 2]

    smooth = 1e-5
    dice = 1.0 - (2.0 * intersect + smooth) / (z_sum + y_sum + smooth)
    is_valid = y_sum > 0.0                  # PyTorch skips absent classes
    loss = jnp.sum(jnp.where(is_valid, dice * w, 0.0))
    valid_count = jnp.sum(is_valid.astype(jnp.float32))
    return jnp.where(valid_count == 0.0, jnp.float32(0.0), loss / n_classes)


if __name__ == "__main__":
    key = jax.random.PRNGKey(0)
    k1, k2 = jax.random.split(key)
    B, C, H, W = 2, 4, 16, 16
    inputs = jax.random.normal(k1, (B, C, H, W), dtype=jnp.float32)
    target = jax.random.randint(k2, (B, H, W), 0, C).astype(jnp.int32)

    fn = jax.jit(functools.partial(dice_loss, n_classes=C, softmax=True))
    loss = jax.block_until_ready(fn(inputs, target))

    # Pure-JAX reference of the PyTorch forward for sanity checking.
    probs = jax.nn.softmax(inputs, axis=1)
    onehot = jax.nn.one_hot(target, C, axis=1, dtype=jnp.float32)
    smooth = 1e-5
    total = 0.0
    valid_count = 0
    for i in range(C):
        t = onehot[:, i]
        s = probs[:, i]
        if float(jnp.sum(t)) == 0.0:
            continue
        inter = float(jnp.sum(s * t))
        ys = float(jnp.sum(t * t))
        zs = float(jnp.sum(s * s))
        total += 1.0 - (2.0 * inter + smooth) / (zs + ys + smooth)
        valid_count += 1
    ref = total / C if valid_count > 0 else 0.0

    # Tolerance accounts for the EUP approx reciprocal in the softmax path.
    assert abs(float(loss) - float(ref)) < 2e-3 * max(1.0, abs(float(ref))), (
        float(loss), float(ref))
    print("KERNEL_OK")
</pallas_src>

<mosaic_0001>
module attributes {stable_mosaic.version = 11 : i64} {
  func.func @_dice_sums_kernel(%arg0: i32, %arg1: i32, %arg2: memref<1x4x256xf32, #tpu.memory_space<vmem>>, %arg3: memref<1x1x256xi32, #tpu.memory_space<vmem>>, %arg4: memref<1x4x3xf32, #tpu.memory_space<vmem>>, %arg5: memref<4x1xf32, #tpu.memory_space<vmem>>, %arg6: memref<4x1xf32, #tpu.memory_space<vmem>>, %arg7: memref<4x1xf32, #tpu.memory_space<vmem>>) attributes {dimension_semantics = [#tpu.dimension_semantics<parallel>, #tpu.dimension_semantics<arbitrary>], iteration_bounds = array<i64: 2, 1>, scalar_prefetch = 0 : i64, scratch_operands = 3 : i64, tpu.core_type = #tpu.core_type<tc>, window_params = [{transform_indices = @transform_0, window_bounds = array<i64: 1, 4, 256>}, {transform_indices = @transform_1, window_bounds = array<i64: 1, 1, 256>}, {transform_indices = @transform_2, window_bounds = array<i64: 1, 4, 3>}]} {
    %c0_i32 = arith.constant 0 : i32
    %0 = arith.cmpi eq, %arg1, %c0_i32 : i32
    %1 = arith.extui %0 : i1 to i32
    %c0_i32_0 = arith.constant 0 : i32
    %2 = arith.cmpi ne, %1, %c0_i32_0 : i32
    scf.if %2 {
      %cst_24 = arith.constant 0.000000e+00 : f32
      %42 = vector.broadcast %cst_24 : f32 to vector<4x1xf32>
      %c0_25 = arith.constant 0 : index
      %c0_26 = arith.constant 0 : index
      %43 = vector.load %arg5[%c0_25, %c0_26] : memref<4x1xf32, #tpu.memory_space<vmem>>, vector<4x1xf32>
      tpu.vector_store %arg5[%c0_25, %c0_26], %42 {strides = array<i32>} : memref<4x1xf32, #tpu.memory_space<vmem>>, vector<4x1xf32>,
      %cst_27 = arith.constant 0.000000e+00 : f32
      %44 = vector.broadcast %cst_27 : f32 to vector<4x1xf32>
      %c0_28 = arith.constant 0 : index
      %c0_29 = arith.constant 0 : index
      %45 = vector.load %arg6[%c0_28, %c0_29] : memref<4x1xf32, #tpu.memory_space<vmem>>, vector<4x1xf32>
      tpu.vector_store %arg6[%c0_28, %c0_29], %44 {strides = array<i32>} : memref<4x1xf32, #tpu.memory_space<vmem>>, vector<4x1xf32>,
      %cst_30 = arith.constant 0.000000e+00 : f32
      %46 = vector.broadcast %cst_30 : f32 to vector<4x1xf32>
      %c0_31 = arith.constant 0 : index
      %c0_32 = arith.constant 0 : index
      %47 = vector.load %arg7[%c0_31, %c0_32] : memref<4x1xf32, #tpu.memory_space<vmem>>, vector<4x1xf32>
      tpu.vector_store %arg7[%c0_31, %c0_32], %46 {strides = array<i32>} : memref<4x1xf32, #tpu.memory_space<vmem>>, vector<4x1xf32>,
    } else {
    }
    %c0 = arith.constant 0 : index
    %c0_1 = arith.constant 0 : index
    %c0_2 = arith.constant 0 : index
    %3 = vector.load %arg2[%c0, %c0_1, %c0_2] : memref<1x4x256xf32, #tpu.memory_space<vmem>>, vector<1x4x256xf32>
    %4 = vector.shape_cast %3 : vector<1x4x256xf32> to vector<4x256xf32>
    %c0_3 = arith.constant 0 : index
    %c0_4 = arith.constant 0 : index
    %c0_5 = arith.constant 0 : index
    %5 = vector.load %arg3[%c0_3, %c0_4, %c0_5] : memref<1x1x256xi32, #tpu.memory_space<vmem>>, vector<1x1x256xi32>
    %6 = vector.shape_cast %5 : vector<1x1x256xi32> to vector<1x256xi32>
    %cst = arith.constant dense<0xFF800000> : vector<256xf32>
    %7 = vector.multi_reduction <maximumf>, %4, %cst [0] : vector<4x256xf32> to vector<256xf32>
    %8 = vector.shape_cast %7 : vector<256xf32> to vector<1x256xf32>
    %9 = vector.broadcast %8 : vector<1x256xf32> to vector<4x256xf32>
    %10 = arith.subf %4, %9 : vector<4x256xf32>
    %11 = math.exp %10 : vector<4x256xf32>
    %cst_6 = arith.constant dense<0.000000e+00> : vector<256xf32>
    %12 = vector.multi_reduction <add>, %11, %cst_6 [0] : vector<4x256xf32> to vector<256xf32>
    %13 = vector.shape_cast %12 : vector<256xf32> to vector<1x256xf32>
    %14 = tpu.reciprocal %13 {approx = true} : vector<1x256xf32> -> vector<1x256xf32>
    %15 = vector.broadcast %14 : vector<1x256xf32> to vector<4x256xf32>
    %16 = arith.mulf %11, %15 : vector<4x256xf32>
    %17 = tpu.iota {dimensions = array<i32: 0>} : vector<4x256xi32>
    %18 = vector.broadcast %6 : vector<1x256xi32> to vector<4x256xi32>
    %19 = arith.cmpi eq, %17, %18 : vector<4x256xi32>
    %20 = arith.extui %19 : vector<4x256xi1> to vector<4x256xi32>
    %21 = arith.sitofp %20 : vector<4x256xi32> to vector<4x256xf32>
    %c0_7 = arith.constant 0 : index
    %c0_8 = arith.constant 0 : index
    %22 = vector.load %arg5[%c0_7, %c0_8] : memref<4x1xf32, #tpu.memory_space<vmem>>, vector<4x1xf32>
    %23 = arith.mulf %16, %21 : vector<4x256xf32>
    %cst_9 = arith.constant dense<0.000000e+00> : vector<4xf32>
    %24 = vector.multi_reduction <add>, %23, %cst_9 [1] : vector<4x256xf32> to vector<4xf32>
    %25 = vector.shape_cast %24 : vector<4xf32> to vector<4x1xf32>
    %26 = arith.addf %22, %25 : vector<4x1xf32>
    %c0_10 = arith.constant 0 : index
    %c0_11 = arith.constant 0 : index
    %27 = vector.load %arg5[%c0_10, %c0_11] : memref<4x1xf32, #tpu.memory_space<vmem>>, vector<4x1xf32>
    tpu.vector_store %arg5[%c0_10, %c0_11], %26 {strides = array<i32>} : memref<4x1xf32, #tpu.memory_space<vmem>>, vector<4x1xf32>,
    %c0_12 = arith.constant 0 : index
    %c0_13 = arith.constant 0 : index
    %28 = vector.load %arg6[%c0_12, %c0_13] : memref<4x1xf32, #tpu.memory_space<vmem>>, vector<4x1xf32>
    %cst_14 = arith.constant dense<0.000000e+00> : vector<4xf32>
    %29 = vector.multi_reduction <add>, %21, %cst_14 [1] : vector<4x256xf32> to vector<4xf32>
    %30 = vector.shape_cast %29 : vector<4xf32> to vector<4x1xf32>
    %31 = arith.addf %28, %30 : vector<4x1xf32>
    %c0_15 = arith.constant 0 : index
    %c0_16 = arith.constant 0 : index
    %32 = vector.load %arg6[%c0_15, %c0_16] : memref<4x1xf32, #tpu.memory_space<vmem>>, vector<4x1xf32>
    tpu.vector_store %arg6[%c0_15, %c0_16], %31 {strides = array<i32>} : memref<4x1xf32, #tpu.memory_space<vmem>>, vector<4x1xf32>,
    %c0_17 = arith.constant 0 : index
    %c0_18 = arith.constant 0 : index
    %33 = vector.load %arg7[%c0_17, %c0_18] : memref<4x1xf32, #tpu.memory_space<vmem>>, vector<4x1xf32>
    %34 = arith.mulf %16, %16 : vector<4x256xf32>
    %cst_19 = arith.constant dense<0.000000e+00> : vector<4xf32>
    %35 = vector.multi_reduction <add>, %34, %cst_19 [1] : vector<4x256xf32> to vector<4xf32>
    %36 = vector.shape_cast %35 : vector<4xf32> to vector<4x1xf32>
    %37 = arith.addf %33, %36 : vector<4x1xf32>
    %c0_20 = arith.constant 0 : index
    %c0_21 = arith.constant 0 : index
    %38 = vector.load %arg7[%c0_20, %c0_21] : memref<4x1xf32, #tpu.memory_space<vmem>>, vector<4x1xf32>
    tpu.vector_store %arg7[%c0_20, %c0_21], %37 {strides = array<i32>} : memref<4x1xf32, #tpu.memory_space<vmem>>, vector<4x1xf32>,
    %c0_i32_22 = arith.constant 0 : i32
    %39 = arith.cmpi eq, %arg1, %c0_i32_22 : i32
    %40 = arith.extui %39 : i1 to i32
    %c0_i32_23 = arith.constant 0 : i32
    %41 = arith.cmpi ne, %40, %c0_i32_23 : i32
    scf.if %41 {
      %c0_24 = arith.constant 0 : index
      %c0_25 = arith.constant 0 : index
      %42 = vector.load %arg5[%c0_24, %c0_25] : memref<4x1xf32, #tpu.memory_space<vmem>>, vector<4x1xf32>
      %c0_26 = arith.constant 0 : index
      %c0_27 = arith.constant 0 : index
      %43 = vector.load %arg6[%c0_26, %c0_27] : memref<4x1xf32, #tpu.memory_space<vmem>>, vector<4x1xf32>
      %c0_28 = arith.constant 0 : index
      %c0_29 = arith.constant 0 : index
      %44 = vector.load %arg7[%c0_28, %c0_29] : memref<4x1xf32, #tpu.memory_space<vmem>>, vector<4x1xf32>
      %45 = tpu.concatenate %42, %43, %44 in 1 : vector<4x1xf32>, vector<4x1xf32>, vector<4x1xf32> -> vector<4x3xf32>
      %c0_30 = arith.constant 0 : index
      %c0_31 = arith.constant 0 : index
      %c0_32 = arith.constant 0 : index
      %46 = vector.load %arg4[%c0_30, %c0_31, %c0_32] : memref<1x4x3xf32, #tpu.memory_space<vmem>>, vector<1x4x3xf32>
      %47 = vector.shape_cast %46 : vector<1x4x3xf32> to vector<4x3xf32>
      %48 = vector.shape_cast %45 : vector<4x3xf32> to vector<1x4x3xf32>
      tpu.vector_store %arg4[%c0_30, %c0_31, %c0_32], %48 {strides = array<i32>} : memref<1x4x3xf32, #tpu.memory_space<vmem>>, vector<1x4x3xf32>,
    } else {
    }
    return
  }
  func.func @transform_0(%arg0: i32, %arg1: i32) -> (i32, i32, i32) {
    %c0_i32 = arith.constant 0 : i32
    %c0_i32_0 = arith.constant 0 : i32
    return %arg0, %c0_i32, %arg1 : i32, i32, i32
  }
  func.func @transform_1(%arg0: i32, %arg1: i32) -> (i32, i32, i32) {
    %c0_i32 = arith.constant 0 : i32
    %c0_i32_0 = arith.constant 0 : i32
    return %arg0, %c0_i32, %arg1 : i32, i32, i32
  }
  func.func @transform_2(%arg0: i32, %arg1: i32) -> (i32, i32, i32) {
    %c0_i32 = arith.constant 0 : i32
    %c0_i32_0 = arith.constant 0 : i32
    %c0_i32_1 = arith.constant 0 : i32
    return %arg0, %c0_i32, %c0_i32_0 : i32, i32, i32
  }
}

</mosaic_0001>

<bundles_post_ra>
// kernel: dice_loss.1
= control target key start
LH: loop header
LB: loop body
LE: loop exit
PB: predicated region body
PF: predicated region fallthrough
CT: control target
= control target key end

     0   :  { %s507_s9 = smov 0   ;;  %s509_s10 = smov 0   ;;  %s564_s0 = inlined_call_operand.vmem [shape: f32[2,4,256], index: 0, kind: input, shape index: {}]   ;;  %s565_s1 = inlined_call_operand.vmem [shape: s32[2,1,256], index: 1, kind: input, shape index: {}]   ;;  %s566_s2 = inlined_call_operand.vmem [shape: f32[2,4,3], index: 2, kind: output, shape index: {}]  }
   0x1   :  { %s511_s11 = smov 0  }
   0x2 LB: > { %s24_s12 = sadd.s32 1, %s483_s10  ;;  %p421_p0 = scmp.ge.s32.totalorder %s487_s11, 1  ;;  %s487_s11 = sphi %s511_s11, %s12_s11   ;;  %s483_s10 = sphi %s509_s10, %s568_s10   ;;  %s479_s9 = sphi %s507_s9, %s567_s9  }
   0x3   : > { %p26_p1 = scmp.ge.s32.totalorder %s24_s12, 2  ;;  %p147_p2 = scmp.lt.s32.totalorder %s487_s11, 3 }
   0x5   : > { %s570_s12 = smov (%p26_p1, %s24_s12), 0  ;;  %p148_p3 = pnand %p421_p0, %p147_p2 }
   0x6   : > { %p181_p4 = scmp.lt.s32.totalorder (!%p148_p3), %s479_s9, 1  ;;  %v262_v0 = vlaneseq (!%p148_p3)  ;;  %vm207_vm0 = vcmask (!%p148_p3), 3072   ;;  %v489_v1 = vmov (!%p148_p3), 0.0   ;;  %vm216_vm1 = vcmask (!%p148_p3), 1043456   ;;  %s490_s21 = smov (!%p148_p3), 1  }
   0x7   : > { %151 = sbr.rel (%p148_p3) target bundleno = 357 (0x165), region = 28  ;;  %209 = vst.msk [vmem:[#allocation3] sm:$0xf] (!%p148_p3), %vm207_vm0, %v489_v1  ;;  %208 = vst.msk [vmem:[#allocation2] sm:$0xf] (!%p148_p3), %vm207_vm0, %v489_v1  ;;  %s491_s22 = smov (!%p148_p3), 2  }
   0x8   : > { %210 = vst.msk [vmem:[#allocation4] sm:$0xf] (!%p148_p3), %vm207_vm0, %v489_v1  ;;  %v263_v2 = vshrl.u32 (!%p148_p3), %v262_v0, 7  ;;  %vm329_vm4 = vcmask (!%p148_p3), 7168   ;;  %vm331_vm5 = vcmask (!%p148_p3), 15360   ;;  %vm333_vm6 = vcmask (!%p148_p3), 19456  }
   0xa   : > { %v266_v3 = vsub.s32 (!%p148_p3), 0, %v263_v2  ;;  %v270_v4 = vsub.s32 (!%p148_p3), 1, %v263_v2 }
   0xe   : > { %s572_s9 = smov (!%p181_p4, %s479_s9), 1  ;;  %v295_v63 = vld [vmem:[#allocation3] sm:$0xf] }
   0xf   : > { %s424_s13 = sshll.u32 %s572_s9, 1  ;;  %s430_s14 = sshll.u32 %s572_s9, 3 }
  0x10   : > { %s197_s17 = scalar_lea.vmem %s565_s1, %s424_s13  ;;  %s188_s20 = scalar_lea.vmem %s564_s0, %s430_s14 }
  0x11   : > { %v212_v5 = vld [vmem:[%s197_s17] sm:$0x3]  ;;  %s425_s23 = sshll.u32 %s572_s9, 2 }
  0x12   : > { %v211_v6 = vld [vmem:[%s188_s20] sm:$0xff]  ;;  %v267_v7 = vrot.slane %v212_v5, %v266_v3  ;;  %v271_v8 = vrot.slane %v212_v5, %v270_v4  ;;  %v303_v3 = vld [vmem:[#allocation4] sm:$0xf]  ;;  %s202_s26 = scalar_lea.vmem %s566_s2, %s425_s23 }
  0x13   : > { %v214_v9 = vcombine.high %v211_v6, %v211_v6  ;;  %v217_v10 = vsel %vm216_vm1, %v211_v6, -inf  ;;  %v278_v4 = vld [vmem:[#allocation2] sm:$0xf] }
  0x14   : > { %v218_v11 = vrot.slane %v217_v10, 4  ;;  %vm272_vm2 = vcmp.eq.s32.totalorder %v263_v2, %v267_v7  ;;  %vm273_vm3 = vcmp.eq.s32.totalorder %v263_v2, %v271_v8 }
  0x15   : > { %v224_v12 = vsel %vm216_vm1, %v214_v9, -inf  ;;  %v426_v13 = vsel %vm272_vm2, 1.0, %v489_v1  ;;  %v427_v14 = vsel %vm273_vm3, 1.0, %v489_v1 }
  0x16   : > { %v219_v15 = vmax.f32 %v217_v10, %v218_v11  ;;  %v225_v16 = vrot.slane %v224_v12, 4  ;;  %v296_v17 = vsel %vm216_vm1, %v426_v13, 0.0  ;;  %v297_v18 = vsel %vm216_vm1, %v427_v14, 0.0 }
  0x17   : > { %v298_v19 = vadd.f32 %v297_v18, %v296_v17  ;;  %v281_v50 = vcombine.low %v426_v13, %v427_v14 }
  0x18   : > { %v220_v20 = vrot.slane %v219_v15, 2  ;;  %v226_v21 = vmax.f32 %v224_v12, %v225_v16 }
  0x19   : > { %299 = vadd.xlane.f32.xlu0 %v298_v19 }
  0x1a   : > { %v221_v22 = vmax.f32 %v219_v15, %v220_v20  ;;  %v227_v23 = vrot.slane %v226_v21, 2 }
  0x1c   : > { %v222_v24 = vrot.slane %v221_v22, 1  ;;  %v228_v25 = vmax.f32 %v226_v21, %v227_v23 }
  0x1e   : > { %v223_v26 = vmax.f32 %v221_v22, %v222_v24  ;;  %v229_v27 = vrot.slane %v228_v25, 1 }
  0x20   : > { %v230_v28 = vmax.f32 %v228_v25, %v229_v27 }
  0x22   : > { %v233_v29 = vcombine.low %v223_v26, %v230_v28 }
  0x24   : > { %v235_v30 = vsub.f32 %v211_v6, %v233_v29 }
  0x26   : > { %v236_v31 = vmul.f32 1.442695, %v235_v30 }
  0x28   : > { %459 = vpow2.f32 %v236_v31 }
  0x32   : > { %v460_v32 = vpop.eup %459 }
  0x33   : > { %v239_v33 = vcombine.high %v460_v32, %v460_v32  ;;  %v241_v34 = vsel %vm216_vm1, %v460_v32, 0.0 }
  0x34   : > { %v242_v35 = vrot.slane %v241_v34, 4 }
  0x35   : > { %v248_v36 = vsel %vm216_vm1, %v239_v33, 0.0 }
  0x36   : > { %v243_v37 = vadd.f32 %v242_v35, %v241_v34  ;;  %v249_v38 = vrot.slane %v248_v36, 4 }
  0x38   : > { %v244_v39 = vrot.slane %v243_v37, 2  ;;  %v250_v40 = vadd.f32 %v249_v38, %v248_v36 }
  0x3a   : > { %v245_v41 = vadd.f32 %v244_v39, %v243_v37  ;;  %v251_v42 = vrot.slane %v250_v40, 2 }
  0x3c   : > { %v246_v43 = vrot.slane %v245_v41, 1  ;;  %v252_v44 = vadd.f32 %v251_v42, %v250_v40 }
  0x3e   : > { %v247_v45 = vadd.f32 %v246_v43, %v245_v41  ;;  %v253_v46 = vrot.slane %v252_v44, 1 }
  0x40   : > { %v254_v47 = vadd.f32 %v253_v46, %v252_v44  ;;  %461 = vrcp.f32 %v247_v45 }
  0x42   : > { %463 = vrcp.f32 %v254_v47 }
  0x4a   : > { %v462_v48 = vpop.eup %461 }
  0x4c   : > { %v464_v49 = vpop.eup %463 }
  0x4d   : > { %v259_v51 = vcombine.low %v462_v48, %v464_v49 }
  0x4f   : > { %v261_v52 = vmul.f32 %v460_v32, %v259_v51 }
  0x51   : > { %v304_v53 = vmul.f32 %v261_v52, %v261_v52  ;;  %v283_v54 = vmul.f32 %v281_v50, %v261_v52 }
  0x53   : > { %v306_v55 = vcombine.high %v304_v53, %v304_v53  ;;  %v308_v56 = vsel %vm216_vm1, %v304_v53, 0.0  ;;  %v285_v57 = vcombine.high %v283_v54, %v283_v54  ;;  %v287_v58 = vsel %vm216_vm1, %v283_v54, 0.0 }
  0x55   : > { %v309_v59 = vsel %vm216_vm1, %v306_v55, 0.0  ;;  %v288_v60 = vsel %vm216_vm1, %v285_v57, 0.0 }
  0x56   : > { %v310_v61 = vadd.f32 %v309_v59, %v308_v56  ;;  %v289_v62 = vadd.f32 %v288_v60, %v287_v58 }
  0x58   : > { %311 = vadd.xlane.f32.xlu0 %v310_v61  ;;  %290 = vadd.xlane.f32.xlu1 %v289_v62 }
  0xa6   : > { %v300_v0 = vpop.xlane.xlu0 %299 }
  0xa7   : > { %v301_v1 = vadd.f32 %v300_v0, %v295_v63 }
  0xa9   : > { %302 = vst.msk [vmem:[#allocation3] sm:$0xf] %vm207_vm0, %v301_v1 }
  0xb0   : > { %v319_v2 = vld [vmem:[#allocation3] sm:$0xf] }
  0xb1   : > { %322 = vrot.lane.b32.xlu1 %v319_v2, %s490_s21 }
  0xe5   : > { %v312_v5 = vpop.xlane.xlu0 %311  ;;  %v291_v6 = vpop.xlane.xlu1 %290 }
  0xe6   : > { %v313_v7 = vadd.f32 %v312_v5, %v303_v3  ;;  %v292_v8 = vadd.f32 %v291_v6, %v278_v4 }
  0xe8   : > { %314 = vst.msk [vmem:[#allocation4] sm:$0xf] %vm207_vm0, %v313_v7  ;;  %294 = vst.msk [vmem:[#allocation2] sm:$0xf] %vm207_vm0, %v292_v8 }
  0xef   : > { %v320_v9 = vld [vmem:[#allocation4] sm:$0xf]  ;;  %v318_v10 = vld [vmem:[#allocation2] sm:$0xf] }
  0xf0   : > { %326 = vrot.lane.b32.xlu0 %v320_v9, %s491_s22 }
 0x123   : > { %v323_v11 = vpop.permute.xlu1 %322 }
 0x124   : > { %v330_v12 = vsel %vm329_vm4, %v318_v10, %v323_v11 }
 0x162   : > { %v327_v13 = vpop.permute.xlu0 %326 }
 0x163   : > { %v332_v14 = vsel %vm331_vm5, %v330_v12, %v327_v13 }
 0x164   : > { %334 = vst.msk [vmem:[%s202_s26] sm:$0xf] %vm333_vm6, %v332_v14 }
 0x165 PF: > { %s12_s11 = sadd.s32 1, %s487_s11   ;;  %s567_s9 = smov %s483_s10 }
 0x166   : > { %p9_p5 = scmp.ge.s32.totalorder %s12_s11, 4   ;;  %s568_s10 = smov %s570_s12 }
 0x168   :  { %11 = sbr.rel (!%p9_p5) target bundleno = 2 (0x2), region = 69 }

</bundles_post_ra>
